<compile_context>
chip_gen: v7x
topology: tpu7x:2x2x1
jax: 0.10.0
libtpu: 0.0.40
codegen_flags: <defaults>
</compile_context>

<pallas_src>
import functools

import jax
import jax.numpy as jnp
from jax.experimental import pallas as pl
from jax.experimental.pallas import tpu as pltpu


_GELU_C1 = 0.7978845608028654            # sqrt(2/pi)
_GELU_C2 = _GELU_C1 * 0.044715           # fused coefficient


def _ffn_kernel(x_ref, w1_ref, b1_ref, w2_ref, b2_ref, o_ref, acc_ref):
    # x_ref:  (tm, E)   w1_ref: (E, th)  b1_ref: (1, th)
    # w2_ref: (th, E)   b2_ref: (1, E)   o_ref:  (tm, E)   acc_ref: (tm, E) f32
    k = pl.program_id(1)
    nk = pl.num_programs(1)

    @pl.when(k == 0)
    def _():
        acc_ref[...] = jnp.zeros_like(acc_ref)

    # First linear layer: native-dtype operands on the MXU, f32 accumulation.
    h = jnp.dot(x_ref[...], w1_ref[...], preferred_element_type=jnp.float32)
    h = h + b1_ref[...].astype(jnp.float32)

    # Tanh-approx GELU in f32: polynomial on the VPU (constants pre-fused),
    # tanh on the EUP (separate bundle slot).
    h2 = h * h
    inner = h * (_GELU_C1 + _GELU_C2 * h2)
    g = 0.5 * h * (1.0 + jnp.tanh(inner))

    # Second linear layer: cast activation back to the weight dtype (bf16 when
    # weights are bf16) so the MXU runs at full rate; accumulate partials in f32.
    g = g.astype(w2_ref.dtype)
    acc_ref[...] += jnp.dot(g, w2_ref[...], preferred_element_type=jnp.float32)

    @pl.when(k == nk - 1)
    def _():
        o_ref[...] = (acc_ref[...] + b2_ref[...].astype(jnp.float32)).astype(o_ref.dtype)


def _round_up(x: int, m: int) -> int:
    return ((x + m - 1) // m) * m


@functools.lru_cache(maxsize=1)
def _vmem_budget_bytes() -> int:
    """Generation-aware VMEM budget: ~80% of physical capacity.

    ~102 MiB on v5e/v6e (128 MiB VMEM), ~51 MiB on v7x (64 MiB / TensorCore).
    """
    try:
        cap = int(pltpu.get_tpu_info().vmem_capacity_bytes)
    except Exception:
        cap = 128 * 1024 * 1024
    return int(cap * 0.8)


def _vmem_estimate(tm: int, th: int, E: int, x_bytes: int, w_bytes: int) -> int:
    """Double-buffered pipelined tiles + scratch + GELU-intermediate headroom."""
    return (2 * tm * E * x_bytes        # x tile
            + 2 * E * th * w_bytes      # W1 tile
            + 2 * th * w_bytes          # b1 tile
            + 2 * th * E * w_bytes      # W2 tile
            + 2 * E * w_bytes           # b2
            + 2 * tm * E * x_bytes      # output tile
            + tm * E * 4                # f32 accumulator scratch
            + 3 * tm * th * 4)          # GELU intermediates headroom


def _select_tiles(M: int, E: int, H: int, x_bytes: int, w_bytes: int, budget: int):
    """Pick (tm, th): largest row tile that fits the per-generation VMEM budget
    (row tile is the dominant lever against weight re-streaming), then largest
    hidden tile.  Keeps >= 2 row tiles so v7x's two TensorCores both get work."""
    if M <= 128:
        tm_cands = [_round_up(M, 8)]
    else:
        tm_max = _round_up(M, 128)
        if M >= 256:
            tm_max = max(128, ((tm_max // 2) // 128) * 128)   # >= 2 parallel steps
        tm_cands = [t for t in (1024, 768, 512, 384, 256, 128) if t <= tm_max] or [128]

    h_max = _round_up(H, 128)
    th_cands = [t for t in (1024, 768, 512, 256, 128) if t <= h_max] or [h_max]

    for tm in tm_cands:
        for th in th_cands:
            if _vmem_estimate(tm, th, E, x_bytes, w_bytes) <= budget:
                return tm, th
    return tm_cands[-1], th_cands[-1]


@functools.partial(jax.jit, static_argnames=("row_tile", "hidden_tile"))
def feed_forward_network(x, w1, b1, w2, b2, *, row_tile=None, hidden_tile=None):
    """x: (B, S, E); w1: (E, H); b1: (H,); w2: (H, E); b2: (E,).

    Weights are stored as (in_features, out_features), i.e. the transpose of
    PyTorch nn.Linear's weight layout, so the kernel does plain x @ W matmuls.
    """
    B, S, E = x.shape
    E2, H = w1.shape
    assert E2 == E and w2.shape == (H, E) and b1.shape == (H,) and b2.shape == (E,)
    M = B * S

    x_bytes = jnp.dtype(x.dtype).itemsize
    w_bytes = jnp.dtype(w1.dtype).itemsize
    budget = _vmem_budget_bytes()

    tm_auto, th_auto = _select_tiles(M, E, H, x_bytes, w_bytes, budget)
    tm = _round_up(int(row_tile), 8) if row_tile is not None else tm_auto
    th = _round_up(int(hidden_tile), 128) if hidden_tile is not None else th_auto

    # Pad M / H up to the tile (padded hidden units contribute 0 via the
    # zero-padded W2 rows; padded rows are sliced off below).
    M_p = _round_up(M, tm)
    H_p = _round_up(H, th)

    x2d = x.reshape(M, E)
    if M_p != M:
        x2d = jnp.pad(x2d, ((0, M_p - M), (0, 0)))
    if H_p != H:
        w1 = jnp.pad(w1, ((0, 0), (0, H_p - H)))
        b1 = jnp.pad(b1, (0, H_p - H))
        w2 = jnp.pad(w2, ((0, H_p - H), (0, 0)))

    b1_2d = b1.reshape(1, H_p)
    b2_2d = b2.reshape(1, E)

    est = _vmem_estimate(tm, th, E, x_bytes, w_bytes)
    vmem_limit = int(min(budget, max(32 * 1024 * 1024, est * 7 // 4)))

    num_row_tiles = M_p // tm
    cost = pl.CostEstimate(
        flops=4 * M_p * E * H_p,                 # two matmuls, 2*M*E*H each
        transcendentals=M_p * H_p,               # one tanh per hidden activation
        bytes_accessed=(M_p * E * x_bytes                      # x read once
                        + num_row_tiles * 2 * E * H_p * w_bytes  # W1+W2 per row tile
                        + num_row_tiles * (H_p + E) * w_bytes    # biases per row tile
                        + M_p * E * x_bytes))                  # output written once

    out2d = pl.pallas_call(
        _ffn_kernel,
        out_shape=jax.ShapeDtypeStruct((M_p, E), x.dtype),
        grid_spec=pltpu.PrefetchScalarGridSpec(
            num_scalar_prefetch=0,
            grid=(M_p // tm, H_p // th),          # reduction (H) axis last
            in_specs=[
                pl.BlockSpec((tm, E), lambda i, k: (i, 0)),   # x row tile
                pl.BlockSpec((E, th), lambda i, k: (0, k)),   # W1 column tile
                pl.BlockSpec((1, th), lambda i, k: (0, k)),   # b1 tile
                pl.BlockSpec((th, E), lambda i, k: (k, 0)),   # W2 row tile
                pl.BlockSpec((1, E), lambda i, k: (0, 0)),    # b2 (constant)
            ],
            out_specs=pl.BlockSpec((tm, E), lambda i, k: (i, 0)),
            scratch_shapes=[pltpu.VMEM((tm, E), jnp.float32)],
        ),
        compiler_params=pltpu.CompilerParams(
            dimension_semantics=("parallel", "arbitrary"),
            vmem_limit_bytes=vmem_limit),
        cost_estimate=cost,
    )(x2d, w1, b1_2d, w2, b2_2d)

    if M_p != M:
        out2d = out2d[:M]
    return out2d.reshape(B, S, E)


def _reference(x, w1, b1, w2, b2):
    h = jnp.einsum("bse,eh->bsh", x.astype(jnp.float32), w1.astype(jnp.float32)) + b1
    c = jnp.float32(_GELU_C1)
    g = 0.5 * h * (1.0 + jnp.tanh(c * (h + 0.044715 * h ** 3)))
    return jnp.einsum("bsh,he->bse", g, w2.astype(jnp.float32)) + b2


if __name__ == "__main__":
    # Small shapes consistent with the module's forward (B, S, E); E is kept
    # lane-dense (multiple of 128) so stores are unmasked.
    B, S, E = 2, 8, 128
    H = 4 * E  # output_dimension defaults to 4 * embedding_dimension

    key = jax.random.PRNGKey(0)
    kx, k1, kb1, k2, kb2 = jax.random.split(key, 5)

    x = jax.random.normal(kx, (B, S, E), dtype=jnp.float32)
    # Deterministic "nn.Linear"-style init (uniform in +/- 1/sqrt(fan_in)).
    w1 = jax.random.uniform(k1, (E, H), jnp.float32, -1.0, 1.0) / jnp.sqrt(E)
    b1 = jax.random.uniform(kb1, (H,), jnp.float32, -1.0, 1.0) / jnp.sqrt(E)
    w2 = jax.random.uniform(k2, (H, E), jnp.float32, -1.0, 1.0) / jnp.sqrt(H)
    b2 = jax.random.uniform(kb2, (E,), jnp.float32, -1.0, 1.0) / jnp.sqrt(H)

    ref = _reference(x, w1, b1, w2, b2)

    # 1) default (auto) tile selection path.
    out = jax.block_until_ready(feed_forward_network(x, w1, b1, w2, b2))
    assert out.shape == (B, S, E)
    assert jnp.allclose(out, ref, atol=1e-4, rtol=1e-4)

    # 2) hidden_tile=256 -> 2 reduction steps, exercising the accumulator path.
    out = jax.block_until_ready(feed_forward_network(x, w1, b1, w2, b2, hidden_tile=256))
    assert jnp.allclose(out, ref, atol=1e-4, rtol=1e-4)

    # 3) awkward shapes: odd sequence length + non-dividing hidden tile exercise
    #    the pad-to-tile path (M=14 -> 16, H=512 -> 768 under th=384).
    x_odd = x[:, :7, :]
    out_odd = jax.block_until_ready(
        feed_forward_network(x_odd, w1, b1, w2, b2, hidden_tile=384))
    ref_odd = _reference(x_odd, w1, b1, w2, b2)
    assert out_odd.shape == (B, 7, E)
    assert jnp.allclose(out_odd, ref_odd, atol=1e-4, rtol=1e-4)

    print("KERNEL_OK")
</pallas_src>

<mosaic_0001>
module attributes {stable_mosaic.version = 11 : i64} {
  func.func @_ffn_kernel(%arg0: i32, %arg1: i32, %arg2: memref<16x128xf32, #tpu.memory_space<vmem>>, %arg3: memref<128x512xf32, #tpu.memory_space<vmem>>, %arg4: memref<1x512xf32, #tpu.memory_space<vmem>>, %arg5: memref<512x128xf32, #tpu.memory_space<vmem>>, %arg6: memref<1x128xf32, #tpu.memory_space<vmem>>, %arg7: memref<16x128xf32, #tpu.memory_space<vmem>>, %arg8: memref<16x128xf32, #tpu.memory_space<vmem>>) attributes {dimension_semantics = [#tpu.dimension_semantics<parallel>, #tpu.dimension_semantics<arbitrary>], iteration_bounds = array<i64: 1, 1>, scalar_prefetch = 0 : i64, scratch_operands = 1 : i64, tpu.core_type = #tpu.core_type<tc>, window_params = [{transform_indices = @transform_0, window_bounds = array<i64: 16, 128>}, {transform_indices = @transform_1, window_bounds = array<i64: 128, 512>}, {transform_indices = @transform_2, window_bounds = array<i64: 1, 512>}, {transform_indices = @transform_3, window_bounds = array<i64: 512, 128>}, {pipeline_mode = #tpu.pipeline_mode<synchronous>, transform_indices = @transform_4, window_bounds = array<i64: 1, 128>}, {transform_indices = @transform_5, window_bounds = array<i64: 16, 128>}]} {
    %c0_i32 = arith.constant 0 : i32
    %0 = arith.cmpi eq, %arg1, %c0_i32 : i32
    %1 = arith.extui %0 : i1 to i32
    %c0_i32_0 = arith.constant 0 : i32
    %2 = arith.cmpi ne, %1, %c0_i32_0 : i32
    scf.if %2 {
      %cst_19 = arith.constant 0.000000e+00 : f32
      %29 = vector.broadcast %cst_19 : f32 to vector<16x128xf32>
      %c0_20 = arith.constant 0 : index
      %c0_21 = arith.constant 0 : index
      %30 = vector.load %arg8[%c0_20, %c0_21] : memref<16x128xf32, #tpu.memory_space<vmem>>, vector<16x128xf32>
      tpu.vector_store %arg8[%c0_20, %c0_21], %29 {strides = array<i32>} : memref<16x128xf32, #tpu.memory_space<vmem>>, vector<16x128xf32>,
    } else {
    }
    %c0 = arith.constant 0 : index
    %c0_1 = arith.constant 0 : index
    %3 = vector.load %arg2[%c0, %c0_1] : memref<16x128xf32, #tpu.memory_space<vmem>>, vector<16x128xf32>
    %c0_2 = arith.constant 0 : index
    %c0_3 = arith.constant 0 : index
    %4 = vector.load %arg3[%c0_2, %c0_3] : memref<128x512xf32, #tpu.memory_space<vmem>>, vector<128x512xf32>
    %cst = arith.constant dense<0.000000e+00> : vector<16x512xf32>
    %5 = tpu.matmul %3, %4, %cst {dimension_numbers = #tpu.dot_dimension_numbers<[1], [0], [0], [1], [0, 0, 1, 1], [], []>} : vector<16x128xf32>, vector<128x512xf32>, vector<16x512xf32> -> vector<16x512xf32>
    %c0_4 = arith.constant 0 : index
    %c0_5 = arith.constant 0 : index
    %6 = vector.load %arg4[%c0_4, %c0_5] : memref<1x512xf32, #tpu.memory_space<vmem>>, vector<1x512xf32>
    %7 = vector.broadcast %6 : vector<1x512xf32> to vector<16x512xf32>
    %8 = arith.addf %5, %7 : vector<16x512xf32>
    %9 = arith.mulf %8, %8 : vector<16x512xf32>
    %cst_6 = arith.constant 0.0356774069 : f32
    %10 = vector.broadcast %cst_6 : f32 to vector<16x512xf32>
    %11 = arith.mulf %10, %9 : vector<16x512xf32>
    %cst_7 = arith.constant 0.797884583 : f32
    %12 = vector.broadcast %cst_7 : f32 to vector<16x512xf32>
    %13 = arith.addf %12, %11 : vector<16x512xf32>
    %14 = arith.mulf %8, %13 : vector<16x512xf32>
    %cst_8 = arith.constant 5.000000e-01 : f32
    %15 = vector.broadcast %cst_8 : f32 to vector<16x512xf32>
    %16 = arith.mulf %15, %8 : vector<16x512xf32>
    %17 = math.tanh %14 : vector<16x512xf32>
    %cst_9 = arith.constant 1.000000e+00 : f32
    %18 = vector.broadcast %cst_9 : f32 to vector<16x512xf32>
    %19 = arith.addf %18, %17 : vector<16x512xf32>
    %20 = arith.mulf %16, %19 : vector<16x512xf32>
    %c0_10 = arith.constant 0 : index
    %c0_11 = arith.constant 0 : index
    %21 = vector.load %arg8[%c0_10, %c0_11] : memref<16x128xf32, #tpu.memory_space<vmem>>, vector<16x128xf32>
    %c0_12 = arith.constant 0 : index
    %c0_13 = arith.constant 0 : index
    %22 = vector.load %arg5[%c0_12, %c0_13] : memref<512x128xf32, #tpu.memory_space<vmem>>, vector<512x128xf32>
    %cst_14 = arith.constant dense<0.000000e+00> : vector<16x128xf32>
    %23 = tpu.matmul %20, %22, %cst_14 {dimension_numbers = #tpu.dot_dimension_numbers<[1], [0], [0], [1], [0, 0, 1, 1], [], []>} : vector<16x512xf32>, vector<512x128xf32>, vector<16x128xf32> -> vector<16x128xf32>
    %24 = arith.addf %21, %23 : vector<16x128xf32>
    %c0_15 = arith.constant 0 : index
    %c0_16 = arith.constant 0 : index
    %25 = vector.load %arg8[%c0_15, %c0_16] : memref<16x128xf32, #tpu.memory_space<vmem>>, vector<16x128xf32>
    tpu.vector_store %arg8[%c0_15, %c0_16], %24 {strides = array<i32>} : memref<16x128xf32, #tpu.memory_space<vmem>>, vector<16x128xf32>,
    %c0_i32_17 = arith.constant 0 : i32
    %26 = arith.cmpi eq, %arg1, %c0_i32_17 : i32
    %27 = arith.extui %26 : i1 to i32
    %c0_i32_18 = arith.constant 0 : i32
    %28 = arith.cmpi ne, %27, %c0_i32_18 : i32
    scf.if %28 {
      %c0_19 = arith.constant 0 : index
      %c0_20 = arith.constant 0 : index
      %29 = vector.load %arg8[%c0_19, %c0_20] : memref<16x128xf32, #tpu.memory_space<vmem>>, vector<16x128xf32>
      %c0_21 = arith.constant 0 : index
      %c0_22 = arith.constant 0 : index
      %30 = vector.load %arg6[%c0_21, %c0_22] : memref<1x128xf32, #tpu.memory_space<vmem>>, vector<1x128xf32>
      %31 = vector.broadcast %30 : vector<1x128xf32> to vector<16x128xf32>
      %32 = arith.addf %29, %31 : vector<16x128xf32>
      %c0_23 = arith.constant 0 : index
      %c0_24 = arith.constant 0 : index
      %33 = vector.load %arg7[%c0_23, %c0_24] : memref<16x128xf32, #tpu.memory_space<vmem>>, vector<16x128xf32>
      tpu.vector_store %arg7[%c0_23, %c0_24], %32 {strides = array<i32>} : memref<16x128xf32, #tpu.memory_space<vmem>>, vector<16x128xf32>,
    } else {
    }
    return
  }
  func.func @transform_0(%arg0: i32, %arg1: i32) -> (i32, i32) {
    %c0_i32 = arith.constant 0 : i32
    %c0_i32_0 = arith.constant 0 : i32
    return %arg0, %c0_i32 : i32, i32
  }
  func.func @transform_1(%arg0: i32, %arg1: i32) -> (i32, i32) {
    %c0_i32 = arith.constant 0 : i32
    %c0_i32_0 = arith.constant 0 : i32
    return %c0_i32, %arg1 : i32, i32
  }
  func.func @transform_2(%arg0: i32, %arg1: i32) -> (i32, i32) {
    %c0_i32 = arith.constant 0 : i32
    %c0_i32_0 = arith.constant 0 : i32
    return %c0_i32, %arg1 : i32, i32
  }
  func.func @transform_3(%arg0: i32, %arg1: i32) -> (i32, i32) {
    %c0_i32 = arith.constant 0 : i32
    %c0_i32_0 = arith.constant 0 : i32
    return %arg1, %c0_i32 : i32, i32
  }
  func.func @transform_4(%arg0: i32, %arg1: i32) -> (i32, i32) {
    %c0_i32 = arith.constant 0 : i32
    %c0_i32_0 = arith.constant 0 : i32
    %c0_i32_1 = arith.constant 0 : i32
    return %c0_i32, %c0_i32_0 : i32, i32
  }
  func.func @transform_5(%arg0: i32, %arg1: i32) -> (i32, i32) {
    %c0_i32 = arith.constant 0 : i32
    %c0_i32_0 = arith.constant 0 : i32
    return %arg0, %c0_i32 : i32, i32
  }
}

</mosaic_0001>

<bundles_post_ra>
// kernel: feed_forward_network.1
= control target key start
LH: loop header
LB: loop body
LE: loop exit
PB: predicated region body
PF: predicated region fallthrough
CT: control target
= control target key end

     0   :  { %10 = vsyncpa [#allocation4], 0  ;;  %s1082_s0 = inlined_call_operand.hbm [shape: f32[16,128], index: 0, kind: input, shape index: {}]   ;;  %s1083_s1 = inlined_call_operand.hbm [shape: f32[128,512], index: 1, kind: input, shape index: {}]   ;;  %s1084_s2 = inlined_call_operand.vmem [shape: f32[1,512], index: 2, kind: input, shape index: {}]   ;;  %s1085_s3 = inlined_call_operand.hbm [shape: f32[512,128], index: 3, kind: input, shape index: {}]   ;;  %s1086_s4 = inlined_call_operand.vmem [shape: f32[1,128], index: 4, kind: input, shape index: {}]   ;;  %s1087_s5 = inlined_call_operand.hbm [shape: f32[16,128], index: 5, kind: output, shape index: {}]  }
   0x1   :  { %11 = vsyncpa [#allocation7], 0 }
   0x2   :  { %12 = vsyncpa [#allocation5], 0  ;;  %s952_s18 = smov [#allocation6]   ;;  %s858_s22 = scalar_lea.hbm %s1083_s1, 8192 }
   0x3   :  { %s30_s19 = sshll.u32 %s952_s18, 4  ;;  %p859_p0 = scmp.ne.s32.totalorder %s1083_s1, %s858_s22  ;;  %s31_s19 = int_to_ptr.vmem [resolvable:$true] %s30_s19 }
   0x4   :  { %p862_p1 = scmp.lt.u32.totalorder %s858_s22, %s1083_s1 }
   0x6   :  { %p864_p2 = pnand %p862_p1, %p859_p0 }
   0x8   :  { %867 = shalt.err (!%p864_p2)
}
   0x9   :  { %s868_s27 = scalar_lea.vmem %s31_s19, 8192  ;;  %p873_p4 = scmp.lt.s32.totalorder %s31_s19, %s31_s19 }
   0xa   :  { %p869_p3 = scmp.ne.s32.totalorder %s31_s19, %s868_s27  ;;  %p874_p5 = scmp.lt.s32.totalorder %s868_s27, %s868_s27 }
   0xc   :  { %p875_p6 = por %p874_p5, %p873_p4 }
   0xe   :  { %p876_p7 = pnand %p875_p6, %p869_p3 }
  0x10   :  { %879 = shalt.err (!%p876_p7)
}
  0x11   :  { %s953_s28 = smov 512   ;;  %s954_s29 = smov 32  }
  0x12   :  { %36 = dma.hbm_to_vmem [thread:$0]  %s1083_s1, 8192, %s31_s19, [#allocation7], %s953_s28, %s953_s28, %s954_s29  }
  0x13   :  { %s955_s7 = smov [#allocation3]   ;;  %s880_s11 = scalar_lea.hbm %s1082_s0, 256 }
  0x14   :  { %s18_s8 = sshll.u32 %s955_s7, 4  ;;  %p881_p8 = scmp.ne.s32.totalorder %s1082_s0, %s880_s11  ;;  %s19_s8 = int_to_ptr.vmem [resolvable:$true] %s18_s8 }
  0x15   :  { %p884_p9 = scmp.lt.u32.totalorder %s880_s11, %s1082_s0 }
  0x17   :  { %p886_p10 = pnand %p884_p9, %p881_p8 }
  0x19   :  { %889 = shalt.err (!%p886_p10)
}
  0x1a   :  { %s890_s16 = scalar_lea.vmem %s19_s8, 256  ;;  %p895_p12 = scmp.lt.s32.totalorder %s19_s8, %s19_s8 }
  0x1b   :  { %p891_p11 = scmp.ne.s32.totalorder %s19_s8, %s890_s16  ;;  %p896_p13 = scmp.lt.s32.totalorder %s890_s16, %s890_s16 }
  0x1d   :  { %p897_p0 = por %p896_p13, %p895_p12 }
  0x1f   :  { %p898_p1 = pnand %p897_p0, %p891_p11 }
  0x21   :  { %901 = shalt.err (!%p898_p1)
}
  0x22   :  { %s956_s1 = smov 128   ;;  %s957_s17 = smov 8  }
  0x23   :  { %24 = dma.hbm_to_vmem [thread:$0]  %s1082_s0, 256, %s19_s8, [#allocation4], %s956_s1, %s956_s1, %s957_s17  }
  0x24   :  { %s958_s20 = smov [#allocation8]   ;;  %s902_s24 = scalar_lea.hbm %s1085_s3, 8192 }
  0x25   :  { %s44_s21 = sshll.u32 %s958_s20, 4  ;;  %p903_p2 = scmp.ne.s32.totalorder %s1085_s3, %s902_s24  ;;  %s45_s21 = int_to_ptr.vmem [resolvable:$true] %s44_s21 }
  0x26   :  { %p906_p3 = scmp.lt.u32.totalorder %s902_s24, %s1085_s3 }
  0x28   :  { %p908_p4 = pnand %p906_p3, %p903_p2 }
  0x2a   :  { %911 = shalt.err (!%p908_p4)
}
  0x2b   :  { %s912_s29 = scalar_lea.vmem %s45_s21, 8192  ;;  %p917_p6 = scmp.lt.s32.totalorder %s45_s21, %s45_s21 }
  0x2c   :  { %p913_p5 = scmp.ne.s32.totalorder %s45_s21, %s912_s29  ;;  %p918_p7 = scmp.lt.s32.totalorder %s912_s29, %s912_s29 }
  0x2e   :  { %p919_p8 = por %p918_p7, %p917_p6 }
  0x30   :  { %p920_p9 = pnand %p919_p8, %p913_p5 }
  0x32   :  { %923 = shalt.err (!%p920_p9)
}
  0x33   :  { %50 = dma.hbm_to_vmem [thread:$0]  %s1085_s3, 8192, %s45_s21, [#allocation7], %s956_s1, %s956_s1, %s957_s17  }
  0x34   :  { %946 = dma.done.wait [#allocation4], 256  }
  0x35   :  { %947 = vsyncadd [#allocation4], 4294967040 }
  0x36   :  { %948 = dma.done.wait [#allocation7], 16384  }
  0x37   :  { %949 = vsyncadd [#allocation7], 4294950912  ;;  %v959_v0 = vmov 0.0   ;;  %v71_v1 = vld [vmem:[#allocation6 + $0x8] sm:$0xff]  ;;  %v73_v3 = vld [vmem:[#allocation6 + $0x18] sm:$0xff]  ;;  %s960_s8 = smov [#allocation9]  }
  0x38   :  { %220 = vmatprep.mubr.f32.mxu0 %v959_v0  ;;  %297 = vmatprep.mubr.f32.mxu1 %v959_v0  ;;  %v75_v2 = vld [vmem:[#allocation6 + $0x28] sm:$0xff]  ;;  %v77_v5 = vld [vmem:[#allocation6 + $0x38] sm:$0xff]  ;;  %v70_v6 = vld [vmem:[#allocation6] sm:$0xff]  ;;  %s615_s9 = sshll.u32 %s960_s8, 4  ;;  %s616_s9 = int_to_ptr.vmem [resolvable:$true] %s615_s9 }
  0x39   :  { %v705_v4 = vpack.c.bf16 %v75_v2, %v71_v1  ;;  %v74_v7 = vld [vmem:[#allocation6 + $0x20] sm:$0xff]  ;;  %v737_v8 = vpack.c.bf16 %v77_v5, %v73_v3  ;;  %v72_v10 = vld [vmem:[#allocation6 + $0x10] sm:$0xff]  ;;  %v79_v12 = vld [vmem:[#allocation6 + $0x48] sm:$0xff]  ;;  %s924_s10 = scalar_lea.vmem %s616_s9, 256  ;;  %p929_p11 = scmp.lt.s32.totalorder %s616_s9, %s616_s9 }
  0x3a   :  { %v707_v9 = vpack.c.bf16 %v74_v7, %v70_v6  ;;  %v76_v11 = vld [vmem:[#allocation6 + $0x30] sm:$0xff]  ;;  %v83_v14 = vld [vmem:[#allocation6 + $0x68] sm:$0xff]  ;;  %v81_v15 = vld [vmem:[#allocation6 + $0x58] sm:$0xff]  ;;  %p925_p10 = scmp.ne.s32.totalorder %s616_s9, %s924_s10  ;;  %p930_p12 = scmp.lt.s32.totalorder %s924_s10, %s924_s10 }
  0x3b   :  { %706 = vmatprep.subr.bf16.mxu0 %v705_v4  ;;  %v739_v13 = vpack.c.bf16 %v76_v11, %v72_v10  ;;  %v85_v16 = vld [vmem:[#allocation6 + $0x78] sm:$0xff]  ;;  %738 = vmatprep.subr.bf16.mxu1 %v737_v8  ;;  %v709_v17 = vpack.c.bf16 %v83_v14, %v79_v12  ;;  %v78_v19 = vld [vmem:[#allocation6 + $0x40] sm:$0xff]  ;;  %v80_v21 = vld [vmem:[#allocation6 + $0x50] sm:$0xff] }
  0x3c   :  { %708 = vmatpush1.bf16.msra.mxu0 %v707_v9  ;;  %v741_v18 = vpack.c.bf16 %v85_v16, %v81_v15  ;;  %v82_v20 = vld [vmem:[#allocation6 + $0x60] sm:$0xff]  ;;  %v84_v23 = vld [vmem:[#allocation6 + $0x70] sm:$0xff]  ;;  %v87_v24 = vld [vmem:[#allocation6 + $0x88] sm:$0xff]  ;;  %p931_p13 = por %p930_p12, %p929_p11 }
  0x3d   :  { %740 = vmatpush1.bf16.msra.mxu1 %v739_v13  ;;  %v711_v22 = vpack.c.bf16 %v82_v20, %v78_v19  ;;  %v91_v25 = vld [vmem:[#allocation6 + $0xa8] sm:$0xff]  ;;  %710 = vmatprep.subr.bf16.mxu0 %v709_v17  ;;  %v743_v26 = vpack.c.bf16 %v84_v23, %v80_v21  ;;  %v89_v28 = vld [vmem:[#allocation6 + $0x98] sm:$0xff]  ;;  %v86_v30 = vld [vmem:[#allocation6 + $0x80] sm:$0xff] }
  0x3e   :  { %742 = vmatprep.subr.bf16.mxu1 %v741_v18  ;;  %v713_v27 = vpack.c.bf16 %v91_v25, %v87_v24  ;;  %v93_v29 = vld [vmem:[#allocation6 + $0xb8] sm:$0xff]  ;;  %v90_v32 = vld [vmem:[#allocation6 + $0xa0] sm:$0xff]  ;;  %v88_v33 = vld [vmem:[#allocation6 + $0x90] sm:$0xff]  ;;  %p932_p0 = pnand %p931_p13, %p925_p10 }
  0x3f   :  { %v745_v31 = vpack.c.bf16 %v93_v29, %v89_v28  ;;  %v92_v34 = vld [vmem:[#allocation6 + $0xb0] sm:$0xff]  ;;  %v715_v35 = vpack.c.bf16 %v90_v32, %v86_v30  ;;  %v95_v36 = vld [vmem:[#allocation6 + $0xc8] sm:$0xff]  ;;  %v97_v38 = vld [vmem:[#allocation6 + $0xd8] sm:$0xff] }
  0x40   :  { %712 = vmatpush1.bf16.msra.mxu0 %v711_v22  ;;  %v99_v37 = vld [vmem:[#allocation6 + $0xe8] sm:$0xff]  ;;  %v747_v39 = vpack.c.bf16 %v92_v34, %v88_v33  ;;  %v101_v41 = vld [vmem:[#allocation6 + $0xf8] sm:$0xff]  ;;  %v94_v42 = vld [vmem:[#allocation6 + $0xc0] sm:$0xff] }
  0x41   :  { %744 = vmatpush1.bf16.msra.mxu1 %v743_v26  ;;  %714 = vmatprep.subr.bf16.mxu0 %v713_v27  ;;  %v717_v40 = vpack.c.bf16 %v99_v37, %v95_v36  ;;  %v98_v43 = vld [vmem:[#allocation6 + $0xe0] sm:$0xff]  ;;  %v749_v44 = vpack.c.bf16 %v101_v41, %v97_v38  ;;  %v96_v45 = vld [vmem:[#allocation6 + $0xd0] sm:$0xff]  ;;  %v103_v47 = vld [vmem:[#allocation6 + $0x108] sm:$0xff] }
  0x42   :  { %746 = vmatprep.subr.bf16.mxu1 %v745_v31  ;;  %v100_v46 = vld [vmem:[#allocation6 + $0xf0] sm:$0xff]  ;;  %v107_v48 = vld [vmem:[#allocation6 + $0x128] sm:$0xff]  ;;  %v105_v49 = vld [vmem:[#allocation6 + $0x118] sm:$0xff]  ;;  %v719_v51 = vpack.c.bf16 %v98_v43, %v94_v42 }
  0x43   :  { %v109_v50 = vld [vmem:[#allocation6 + $0x138] sm:$0xff]  ;;  %v751_v52 = vpack.c.bf16 %v100_v46, %v96_v45  ;;  %v721_v53 = vpack.c.bf16 %v107_v48, %v103_v47  ;;  %v102_v54 = vld [vmem:[#allocation6 + $0x100] sm:$0xff]  ;;  %v104_v56 = vld [vmem:[#allocation6 + $0x110] sm:$0xff] }
  0x44   :  { %716 = vmatpush1.bf16.msra.mxu0 %v715_v35  ;;  %v106_v55 = vld [vmem:[#allocation6 + $0x120] sm:$0xff]  ;;  %v753_v57 = vpack.c.bf16 %v109_v50, %v105_v49  ;;  %v108_v58 = vld [vmem:[#allocation6 + $0x130] sm:$0xff]  ;;  %v111_v59 = vld [vmem:[#allocation6 + $0x148] sm:$0xff] }
  0x45   :  { %748 = vmatpush1.bf16.msra.mxu1 %v747_v39  ;;  %718 = vmatprep.subr.bf16.mxu0 %v717_v40  ;;  %v115_v60 = vld [vmem:[#allocation6 + $0x168] sm:$0xff]  ;;  %v113_v61 = vld [vmem:[#allocation6 + $0x158] sm:$0xff]  ;;  %v723_v63 = vpack.c.bf16 %v106_v55, %v102_v54  ;;  %v755_v1 = vpack.c.bf16 %v108_v58, %v104_v56  ;;  %v110_v3 = vld [vmem:[#allocation6 + $0x140] sm:$0xff] }
  0x46   :  { %750 = vmatprep.subr.bf16.mxu1 %v749_v44  ;;  %v117_v62 = vld [vmem:[#allocation6 + $0x178] sm:$0xff]  ;;  %v725_v2 = vpack.c.bf16 %v115_v60, %v111_v59  ;;  %v114_v4 = vld [vmem:[#allocation6 + $0x160] sm:$0xff]  ;;  %v112_v5 = vld [vmem:[#allocation6 + $0x150] sm:$0xff] }
  0x47   :  { %v757_v6 = vpack.c.bf16 %v117_v62, %v113_v61  ;;  %v116_v7 = vld [vmem:[#allocation6 + $0x170] sm:$0xff]  ;;  %v119_v8 = vld [vmem:[#allocation6 + $0x188] sm:$0xff]  ;;  %v121_v10 = vld [vmem:[#allocation6 + $0x198] sm:$0xff]  ;;  %v727_v12 = vpack.c.bf16 %v114_v4, %v110_v3 }
  0x48   :  { %720 = vmatpush1.bf16.msra.mxu0 %v719_v51  ;;  %v123_v9 = vld [vmem:[#allocation6 + $0x1a8] sm:$0xff]  ;;  %v125_v11 = vld [vmem:[#allocation6 + $0x1b8] sm:$0xff]  ;;  %v759_v13 = vpack.c.bf16 %v116_v7, %v112_v5  ;;  %v118_v15 = vld [vmem:[#allocation6 + $0x180] sm:$0xff] }
  0x49   :  { %752 = vmatpush1.bf16.msra.mxu1 %v751_v52  ;;  %722 = vmatprep.subr.bf16.mxu0 %v721_v53  ;;  %v729_v14 = vpack.c.bf16 %v123_v9, %v119_v8  ;;  %v122_v16 = vld [vmem:[#allocation6 + $0x1a0] sm:$0xff]  ;;  %v120_v17 = vld [vmem:[#allocation6 + $0x190] sm:$0xff]  ;;  %v761_v18 = vpack.c.bf16 %v125_v11, %v121_v10  ;;  %v127_v20 = vld [vmem:[#allocation6 + $0x1c8] sm:$0xff] }
  0x4a   :  { %754 = vmatprep.subr.bf16.mxu1 %v753_v57  ;;  %v124_v19 = vld [vmem:[#allocation6 + $0x1b0] sm:$0xff]  ;;  %v131_v21 = vld [vmem:[#allocation6 + $0x1e8] sm:$0xff]  ;;  %v129_v22 = vld [vmem:[#allocation6 + $0x1d8] sm:$0xff]  ;;  %v731_v24 = vpack.c.bf16 %v122_v16, %v118_v15 }
  0x4b   :  { %v133_v23 = vld [vmem:[#allocation6 + $0x1f8] sm:$0xff]  ;;  %v763_v25 = vpack.c.bf16 %v124_v19, %v120_v17  ;;  %v733_v26 = vpack.c.bf16 %v131_v21, %v127_v20  ;;  %v126_v27 = vld [vmem:[#allocation6 + $0x1c0] sm:$0xff]  ;;  %v128_v29 = vld [vmem:[#allocation6 + $0x1d0] sm:$0xff] }
  0x4c   :  { %724 = vmatpush1.bf16.msra.mxu0 %v723_v63  ;;  %v130_v28 = vld [vmem:[#allocation6 + $0x1e0] sm:$0xff]  ;;  %v765_v30 = vpack.c.bf16 %v133_v23, %v129_v22  ;;  %v132_v31 = vld [vmem:[#allocation6 + $0x1f0] sm:$0xff]  ;;  %v393_v33 = vld [vmem:[#allocation8 + $0x88] sm:$0xff] }
  0x4d   :  { %756 = vmatpush1.bf16.msra.mxu1 %v755_v1  ;;  %726 = vmatprep.subr.bf16.mxu0 %v725_v2  ;;  %v392_v32 = vld [vmem:[#allocation8 + $0x80] sm:$0xff]  ;;  %v425_v35 = vld [vmem:[#allocation8 + $0x188] sm:$0xff]  ;;  %v735_v36 = vpack.c.bf16 %v130_v28, %v126_v27  ;;  %v767_v37 = vpack.c.bf16 %v132_v31, %v128_v29  ;;  %v68_v44 = vld [vmem:[#allocation3] sm:$0xff] }
  0x4e   :  { %758 = vmatprep.subr.bf16.mxu1 %v757_v6  ;;  %v424_v34 = vld [vmem:[#allocation8 + $0x180] sm:$0xff]  ;;  %v769_v38 = vpack.c.bf16 %v393_v33, %v392_v32  ;;  %v377_v41 = vld [vmem:[#allocation8 + $0x8] sm:$0xff]  ;;  %v69_v47 = vld [vmem:[#allocation3 + $0x8] sm:$0xff] }
  0x4f   :  { %v801_v39 = vpack.c.bf16 %v425_v35, %v424_v34  ;;  %v376_v40 = vld [vmem:[#allocation8] sm:$0xff]  ;;  %v409_v43 = vld [vmem:[#allocation8 + $0x108] sm:$0xff]  ;;  %v394_v48 = vld [vmem:[#allocation8 + $0x90] sm:$0xff] }
  0x50   :  { %728 = vmatpush1.bf16.msra.mxu0 %v727_v12  ;;  %v408_v42 = vld [vmem:[#allocation8 + $0x100] sm:$0xff]  ;;  %v771_v45 = vpack.c.bf16 %v377_v41, %v376_v40  ;;  %v395_v49 = vld [vmem:[#allocation8 + $0x98] sm:$0xff]  ;;  %v426_v50 = vld [vmem:[#allocation8 + $0x190] sm:$0xff] }
  0x51   :  { %760 = vmatpush1.bf16.msra.mxu1 %v759_v13  ;;  %730 = vmatprep.subr.bf16.mxu0 %v729_v14  ;;  %v803_v46 = vpack.c.bf16 %v409_v43, %v408_v42  ;;  %v773_v51 = vpack.c.bf16 %v395_v49, %v394_v48  ;;  %v427_v52 = vld [vmem:[#allocation8 + $0x198] sm:$0xff]  ;;  %v378_v54 = vld [vmem:[#allocation8 + $0x10] sm:$0xff]  ;;  %v397_v60 = vld [vmem:[#allocation8 + $0xa8] sm:$0xff] }
  0x52   :  { %762 = vmatprep.subr.bf16.mxu1 %v761_v18  ;;  %v805_v53 = vpack.c.bf16 %v427_v52, %v426_v50  ;;  %v379_v55 = vld [vmem:[#allocation8 + $0x18] sm:$0xff]  ;;  %v410_v56 = vld [vmem:[#allocation8 + $0x110] sm:$0xff]  ;;  %v428_v61 = vld [vmem:[#allocation8 + $0x1a0] sm:$0xff] }
  0x53   :  { %v775_v57 = vpack.c.bf16 %v379_v55, %v378_v54  ;;  %v411_v58 = vld [vmem:[#allocation8 + $0x118] sm:$0xff]  ;;  %v429_v63 = vld [vmem:[#allocation8 + $0x1a8] sm:$0xff]  ;;  %v380_v2 = vld [vmem:[#allocation8 + $0x20] sm:$0xff] }
  0x54   :  { %732 = vmatpush1.bf16.msra.mxu0 %v731_v24  ;;  %v807_v59 = vpack.c.bf16 %v411_v58, %v410_v56  ;;  %v809_v1 = vpack.c.bf16 %v429_v63, %v428_v61  ;;  %v381_v3 = vld [vmem:[#allocation8 + $0x28] sm:$0xff]  ;;  %v412_v4 = vld [vmem:[#allocation8 + $0x120] sm:$0xff]  ;;  %v398_v8 = vld [vmem:[#allocation8 + $0xb0] sm:$0xff] }
  0x55   :  { %764 = vmatpush1.bf16.msra.mxu1 %v763_v25  ;;  %734 = vmatprep.subr.bf16.mxu0 %v733_v26  ;;  %v779_v5 = vpack.c.bf16 %v381_v3, %v380_v2  ;;  %v413_v6 = vld [vmem:[#allocation8 + $0x128] sm:$0xff]  ;;  %v399_v9 = vld [vmem:[#allocation8 + $0xb8] sm:$0xff]  ;;  %v430_v10 = vld [vmem:[#allocation8 + $0x1b0] sm:$0xff] }
  0x56   :  { %766 = vmatprep.subr.bf16.mxu1 %v765_v30  ;;  %v811_v7 = vpack.c.bf16 %v413_v6, %v412_v4  ;;  %v781_v11 = vpack.c.bf16 %v399_v9, %v398_v8  ;;  %v431_v12 = vld [vmem:[#allocation8 + $0x1b8] sm:$0xff]  ;;  %v382_v13 = vld [vmem:[#allocation8 + $0x30] sm:$0xff]  ;;  %v400_v20 = vld [vmem:[#allocation8 + $0xc0] sm:$0xff]  ;;  %v136_v4 = vlaneseq }
  0x57   :  { %v383_v14 = vld [vmem:[#allocation8 + $0x38] sm:$0xff]  ;;  %v813_v15 = vpack.c.bf16 %v431_v12, %v430_v10  ;;  %v414_v17 = vld [vmem:[#allocation8 + $0x130] sm:$0xff]  ;;  %v401_v21 = vld [vmem:[#allocation8 + $0xc8] sm:$0xff] }
  0x58   :  { %736 = vmatpush1.bf16.msra.mxu0 %v735_v36  ;;  %v783_v16 = vpack.c.bf16 %v383_v14, %v382_v13  ;;  %v415_v18 = vld [vmem:[#allocation8 + $0x138] sm:$0xff]  ;;  %v432_v22 = vld [vmem:[#allocation8 + $0x1c0] sm:$0xff]  ;;  %v785_v23 = vpack.c.bf16 %v401_v21, %v400_v20  ;;  %v433_v24 = vld [vmem:[#allocation8 + $0x1c8] sm:$0xff] }
  0x59   :  { %768 = vmatpush1.bf16.msra.mxu1 %v767_v37  ;;  %770 = vmatprep.subr.bf16.mxu0 %v769_v38  ;;  %v815_v19 = vpack.c.bf16 %v415_v18, %v414_v17  ;;  %v384_v25 = vld [vmem:[#allocation8 + $0x40] sm:$0xff]  ;;  %v385_v26 = vld [vmem:[#allocation8 + $0x48] sm:$0xff]  ;;  %v817_v27 = vpack.c.bf16 %v433_v24, %v432_v22  ;;  %v402_v32 = vld [vmem:[#allocation8 + $0xd0] sm:$0xff] }
  0x5a   :  { %802 = vmatprep.subr.bf16.mxu1 %v801_v39  ;;  %v787_v28 = vpack.c.bf16 %v385_v26, %v384_v25  ;;  %v416_v29 = vld [vmem:[#allocation8 + $0x140] sm:$0xff]  ;;  %v417_v30 = vld [vmem:[#allocation8 + $0x148] sm:$0xff]  ;;  %v403_v33 = vld [vmem:[#allocation8 + $0xd8] sm:$0xff] }
  0x5b   :  { %221 = vmatmul.mubr.f32.vlgmr.msra.gmra.mrb[0].mxu0 %v68_v44  ;;  %v819_v31 = vpack.c.bf16 %v417_v30, %v416_v29  ;;  %v434_v34 = vld [vmem:[#allocation8 + $0x1d0] sm:$0xff]  ;;  %v789_v35 = vpack.c.bf16 %v403_v33, %v402_v32  ;;  %v435_v36 = vld [vmem:[#allocation8 + $0x1d8] sm:$0xff]  ;;  %v437_v48 = vld [vmem:[#allocation8 + $0x1e8] sm:$0xff] }
  0x5c   :  { %298 = vmatmul.mubr.f32.vlgmr.msra.gmra.mrb[0].mxu1 %v68_v44  ;;  %226 = vmatprep.mubr.f32.mxu0 %v959_v0  ;;  %v386_v37 = vld [vmem:[#allocation8 + $0x50] sm:$0xff]  ;;  %v387_v38 = vld [vmem:[#allocation8 + $0x58] sm:$0xff]  ;;  %v821_v39 = vpack.c.bf16 %v435_v36, %v434_v34  ;;  %v404_v44 = vld [vmem:[#allocation8 + $0xe0] sm:$0xff] }
  0x5d   :  { %303 = vmatprep.mubr.f32.mxu1 %v959_v0  ;;  %772 = vmatpush3.bf16.msra.mxu0 %v771_v45  ;;  %v396_v0 = vld [vmem:[#allocation8 + $0xa0] sm:$0xff]  ;;  %v791_v40 = vpack.c.bf16 %v387_v38, %v386_v37  ;;  %v418_v41 = vld [vmem:[#allocation8 + $0x150] sm:$0xff]  ;;  %v419_v42 = vld [vmem:[#allocation8 + $0x158] sm:$0xff] }
  0x5e   :  { %804 = vmatpush3.bf16.msra.mxu1 %v803_v46  ;;  %774 = vmatprep.subr.bf16.mxu0 %v773_v51  ;;  %v777_v62 = vpack.c.bf16 %v397_v60, %v396_v0  ;;  %v823_v43 = vpack.c.bf16 %v419_v42, %v418_v41  ;;  %v405_v45 = vld [vmem:[#allocation8 + $0xe8] sm:$0xff]  ;;  %v436_v46 = vld [vmem:[#allocation8 + $0x1e0] sm:$0xff]  ;;  %v406_v55 = vld [vmem:[#allocation8 + $0xf0] sm:$0xff] }
  0x5f   :  { %227 = vmatmul.mubr.f32.gmra.mrb[2].mxu0 %v69_v47  ;;  %806 = vmatprep.subr.bf16.mxu1 %v805_v53  ;;  %v388_v49 = vld [vmem:[#allocation8 + $0x60] sm:$0xff]  ;;  %v389_v50 = vld [vmem:[#allocation8 + $0x68] sm:$0xff]  ;;  %v825_v51 = vpack.c.bf16 %v437_v48, %v436_v46  ;;  %v438_v58 = vld [vmem:[#allocation8 + $0x1f0] sm:$0xff] }
  0x60   :  { %304 = vmatmul.mubr.f32.gmra.mrb[2].mxu1 %v69_v47  ;;  %v793_v47 = vpack.c.bf16 %v405_v45, %v404_v44  ;;  %v795_v52 = vpack.c.bf16 %v389_v50, %v388_v49  ;;  %v420_v53 = vld [vmem:[#allocation8 + $0x160] sm:$0xff]  ;;  %v421_v54 = vld [vmem:[#allocation8 + $0x168] sm:$0xff]  ;;  %v390_v61 = vld [vmem:[#allocation8 + $0x70] sm:$0xff] }
  0x61   :  { %776 = vmatpush3.bf16.msra.mxu0 %v775_v57  ;;  %v827_v56 = vpack.c.bf16 %v421_v54, %v420_v53  ;;  %v407_v57 = vld [vmem:[#allocation8 + $0xf8] sm:$0xff]  ;;  %v422_v63 = vld [vmem:[#allocation8 + $0x170] sm:$0xff] }
  0x62   :  { %808 = vmatpush3.bf16.msra.mxu1 %v807_v59  ;;  %778 = vmatprep.subr.bf16.mxu0 %v777_v62  ;;  %v439_v59 = vld [vmem:[#allocation8 + $0x1f8] sm:$0xff]  ;;  %v797_v0 = vpack.c.bf16 %v407_v57, %v406_v55 }
  0x63   :  { %810 = vmatprep.subr.bf16.mxu1 %v809_v1  ;;  %v829_v60 = vpack.c.bf16 %v439_v59, %v438_v58  ;;  %v391_v62 = vld [vmem:[#allocation8 + $0x78] sm:$0xff] }
  0x64   :  { %v799_v1 = vpack.c.bf16 %v391_v62, %v390_v61  ;;  %v423_v2 = vld [vmem:[#allocation8 + $0x178] sm:$0xff] }
  0x65   :  { %780 = vmatpush3.bf16.msra.mxu0 %v779_v5  ;;  %v831_v3 = vpack.c.bf16 %v423_v2, %v422_v63  ;;  %v137_v5 = vshrl.u32 %v136_v4, 7 }
  0x66   :  { %812 = vmatpush3.bf16.msra.mxu1 %v811_v7  ;;  %782 = vmatprep.subr.bf16.mxu0 %v781_v11  ;;  %v134_v7 = vld [vmem:[%s1084_s2] sm:$0xf] }
  0x67   :  { %814 = vmatprep.subr.bf16.mxu1 %v813_v15  ;;  %v138_v6 = vsub.s32 0, %v137_v5  ;;  %v146_v8 = vsub.s32 2, %v137_v5  ;;  %v142_v9 = vsub.s32 1, %v137_v5  ;;  %v150_v10 = vsub.s32 3, %v137_v5 }
  0x69   :  { %784 = vmatpush3.bf16.msra.mxu0 %v783_v16  ;;  %v139_v11 = vrot.slane %v134_v7, %v138_v6  ;;  %v147_v12 = vrot.slane %v134_v7, %v146_v8  ;;  %v143_v13 = vrot.slane %v134_v7, %v142_v9  ;;  %v151_v14 = vrot.slane %v134_v7, %v150_v10 }
  0x6a   :  { %816 = vmatpush3.bf16.msra.mxu1 %v815_v19  ;;  %786 = vmatprep.subr.bf16.mxu0 %v785_v23 }
  0x6b   :  { %818 = vmatprep.subr.bf16.mxu1 %v817_v27 }
  0x6d   :  { %788 = vmatpush3.bf16.msra.mxu0 %v787_v28 }
  0x6e   :  { %820 = vmatpush3.bf16.msra.mxu1 %v819_v31  ;;  %790 = vmatprep.subr.bf16.mxu0 %v789_v35 }
  0x6f   :  { %822 = vmatprep.subr.bf16.mxu1 %v821_v39 }
  0x71   :  { %792 = vmatpush3.bf16.msra.mxu0 %v791_v40 }
  0x72   :  { %824 = vmatpush3.bf16.msra.mxu1 %v823_v43  ;;  %794 = vmatprep.subr.bf16.mxu0 %v793_v47 }
  0x73   :  { %826 = vmatprep.subr.bf16.mxu1 %v825_v51 }
  0x75   :  { %796 = vmatpush3.bf16.msra.mxu0 %v795_v52 }
  0x76   :  { %828 = vmatpush3.bf16.msra.mxu1 %v827_v56  ;;  %798 = vmatprep.subr.bf16.mxu0 %v797_v0 }
  0x77   :  { %830 = vmatprep.subr.bf16.mxu1 %v829_v60 }
  0x79   :  { %800 = vmatpush3.bf16.msra.mxu0 %v799_v1 }
  0x7a   :  { %832 = vmatpush3.bf16.msra.mxu1 %v831_v3 }
 0x12e   :  { %v222_v15 = vpop.f32.mrb[0].mxu0 }
 0x12f   :  { %v1040_v16 = vadd.f32 %v222_v15, %v139_v11  ;;  %v299_v17 = vpop.f32.mrb[0].mxu1  ;;  %v224_v18 = vpop.f32.mrb[1].mxu0 }
 0x130   :  { %v1042_v19 = vadd.f32 %v299_v17, %v147_v12  ;;  %v225_v20 = vadd.f32 %v224_v18, %v143_v13  ;;  %v301_v21 = vpop.f32.mrb[1].mxu1 }
 0x131   :  { %v310_v22 = vmul.f32 %v1040_v16, %v1040_v16  ;;  %v302_v23 = vadd.f32 %v301_v21, %v151_v14  ;;  %v342_v8 = vmul.f32 0.5, %v1040_v16 }
 0x132   :  { %v312_v24 = vmul.f32 %v1042_v19, %v1042_v19  ;;  %v311_v25 = vmul.f32 %v225_v20, %v225_v20  ;;  %v228_v26 = vpop.f32.mrb[2].mxu0  ;;  %v343_v5 = vmul.f32 0.5, %v225_v20 }
 0x133   :  { %v318_v27 = vmul.f32 0.035677407, %v310_v22  ;;  %v313_v28 = vmul.f32 %v302_v23, %v302_v23  ;;  %v1048_v29 = vadd.f32 %v228_v26, %v139_v11  ;;  %v305_v30 = vpop.f32.mrb[2].mxu1  ;;  %v230_v31 = vpop.f32.mrb[3].mxu0  ;;  %v345_v9 = vmul.f32 0.5, %v302_v23 }
 0x134   :  { %v320_v32 = vmul.f32 0.035677407, %v312_v24  ;;  %v319_v33 = vmul.f32 0.035677407, %v311_v25  ;;  %v1050_v34 = vadd.f32 %v305_v30, %v147_v12  ;;  %v231_v35 = vadd.f32 %v230_v31, %v143_v13  ;;  %v307_v36 = vpop.f32.mrb[3].mxu1 }
 0x135   :  { %v326_v37 = vadd.f32 0.7978846, %v318_v27  ;;  %v321_v38 = vmul.f32 0.035677407, %v313_v28  ;;  %v314_v39 = vmul.f32 %v1048_v29, %v1048_v29  ;;  %v308_v54 = vadd.f32 %v307_v36, %v151_v14 }
 0x136   :  { %v328_v40 = vadd.f32 0.7978846, %v320_v32  ;;  %v327_v41 = vadd.f32 0.7978846, %v319_v33  ;;  %v316_v42 = vmul.f32 %v1050_v34, %v1050_v34  ;;  %v315_v46 = vmul.f32 %v231_v35, %v231_v35 }
 0x137   :  { %v334_v43 = vmul.f32 %v326_v37, %v1040_v16  ;;  %v329_v44 = vadd.f32 0.7978846, %v321_v38  ;;  %v322_v45 = vmul.f32 0.035677407, %v314_v39  ;;  %v317_v57 = vmul.f32 %v308_v54, %v308_v54  ;;  %v628_v38 = vld [vmem:[%s1086_s4] ss:$0 sm:$0xff] }
 0x138   :  { %v336_v47 = vmul.f32 %v328_v40, %v1042_v19  ;;  %v335_v48 = vmul.f32 %v327_v41, %v225_v20  ;;  %v324_v49 = vmul.f32 0.035677407, %v316_v42  ;;  %v323_v52 = vmul.f32 0.035677407, %v315_v46 }
 0x139   :  { %842 = vtanh.f32 %v334_v43  ;;  %v337_v50 = vmul.f32 %v329_v44, %v302_v23  ;;  %v330_v51 = vadd.f32 0.7978846, %v322_v45  ;;  %v325_v0 = vmul.f32 0.035677407, %v317_v57 }
 0x13a   :  { %844 = vtanh.f32 %v336_v47  ;;  %v332_v53 = vadd.f32 0.7978846, %v324_v49  ;;  %v331_v56 = vadd.f32 0.7978846, %v323_v52  ;;  %v344_v11 = vmul.f32 0.5, %v1042_v19 }
 0x13b   :  { %846 = vtanh.f32 %v335_v48  ;;  %v338_v55 = vmul.f32 %v330_v51, %v1048_v29  ;;  %v333_v60 = vadd.f32 0.7978846, %v325_v0  ;;  %v347_v21 = vmul.f32 0.5, %v231_v35 }
 0x13c   :  { %848 = vtanh.f32 %v337_v50  ;;  %v340_v58 = vmul.f32 %v332_v53, %v1050_v34  ;;  %v339_v59 = vmul.f32 %v331_v56, %v231_v35  ;;  %v346_v20 = vmul.f32 0.5, %v1048_v29 }
 0x13d   :  { %850 = vtanh.f32 %v338_v55  ;;  %v341_v61 = vmul.f32 %v333_v60, %v308_v54  ;;  %v349_v26 = vmul.f32 0.5, %v308_v54  ;;  %v348_v28 = vmul.f32 0.5, %v1050_v34 }
 0x13e   :  { %852 = vtanh.f32 %v339_v59 }
 0x13f   :  { %854 = vtanh.f32 %v340_v58 }
 0x140   :  { %856 = vtanh.f32 %v341_v61 }
 0x143   :  { %v843_v62 = vpop.eup %842 }
 0x144   :  { %v845_v63 = vpop.eup %844  ;;  %v358_v2 = vadd.f32 1.0, %v843_v62 }
 0x145   :  { %v847_v1 = vpop.eup %846  ;;  %v360_v4 = vadd.f32 1.0, %v845_v63 }
 0x146   :  { %v849_v3 = vpop.eup %848  ;;  %v359_v6 = vadd.f32 1.0, %v847_v1  ;;  %v366_v14 = vmul.f32 %v358_v2, %v342_v8 }
 0x147   :  { %v851_v7 = vpop.eup %850  ;;  %v361_v10 = vadd.f32 1.0, %v849_v3  ;;  %v368_v18 = vmul.f32 %v360_v4, %v344_v11 }
 0x148   :  { %v367_v12 = vmul.f32 %v359_v6, %v343_v5  ;;  %v853_v13 = vpop.eup %852  ;;  %v362_v17 = vadd.f32 1.0, %v851_v7 }
 0x149   :  { %v369_v15 = vmul.f32 %v361_v10, %v345_v9  ;;  %v363_v22 = vadd.f32 1.0, %v853_v13  ;;  %v855_v24 = vpop.eup %854 }
 0x14a   :  { %504 = vmatprep.mubr.f32.mxu0 %v367_v12  ;;  %v370_v23 = vmul.f32 %v362_v17, %v346_v20  ;;  %v857_v25 = vpop.eup %856  ;;  %v364_v19 = vadd.f32 1.0, %v855_v24 }
 0x14b   :  { %579 = vmatprep.mubr.f32.mxu1 %v369_v15  ;;  %505 = vmatmul.mubr.f32.vlgmr.msra.gmra.mrb[4].mxu0 %v366_v14  ;;  %v371_v16 = vmul.f32 %v363_v22, %v347_v21  ;;  %v365_v27 = vadd.f32 1.0, %v857_v25 }
 0x14c   :  { %580 = vmatmul.mubr.f32.vlgmr.msra.gmra.mrb[4].mxu1 %v368_v18  ;;  %v372_v31 = vmul.f32 %v364_v19, %v348_v28 }
 0x14d   :  { %509 = vmatprep.mubr.f32.mxu0 %v371_v16  ;;  %v373_v30 = vmul.f32 %v365_v27, %v349_v26 }
 0x14f   :  { %510 = vmatmul.mubr.f32.gmra.mrb[6].mxu0 %v370_v23  ;;  %584 = vmatprep.mubr.f32.mxu1 %v373_v30 }
 0x150   :  { %585 = vmatmul.mubr.f32.gmra.mrb[6].mxu1 %v372_v31 }
 0x21e   :  { %v661_v32 = vpop.f32.mrb[4].mxu0 }
 0x21f   :  { %v699_v33 = vpop.f32.mrb[4].mxu1  ;;  %v662_v29 = vpop.f32.mrb[5].mxu0 }
 0x220   :  { %v663_v35 = vadd.f32 %v662_v29, %v661_v32  ;;  %v700_v36 = vpop.f32.mrb[5].mxu1 }
 0x221   :  { %v701_v37 = vadd.f32 %v700_v36, %v699_v33 }
 0x222   :  { %v664_v39 = vpop.f32.mrb[6].mxu0 }
 0x223   :  { %v582_v40 = vadd.f32 %v701_v37, %v663_v35  ;;  %v665_v41 = vpop.f32.mrb[7].mxu0  ;;  %v702_v34 = vpop.f32.mrb[6].mxu1 }
 0x224   :  { %v666_v42 = vadd.f32 %v665_v41, %v664_v39  ;;  %v703_v44 = vpop.f32.mrb[7].mxu1 }
 0x225   :  { %v606_v43 = vadd.f32 %v628_v38, %v582_v40  ;;  %v704_v45 = vadd.f32 %v703_v44, %v702_v34 }
 0x227   :  { %608 = vst [vmem:[#allocation9] sm:$0xff] %v606_v43  ;;  %v587_v46 = vadd.f32 %v704_v45, %v666_v42 }
 0x229   :  { %v607_v47 = vadd.f32 %v628_v38, %v587_v46 }
 0x22b   :  { %609 = vst [vmem:[#allocation9 + $0x8] sm:$0xff] %v607_v47 }
 0x22c   :  { %935 = shalt.err (!%p932_p0)
}
 0x22d   :  { %s936_s12 = scalar_lea.hbm %s1087_s5, 256 }
 0x22e   :  { %p937_p1 = scmp.ne.s32.totalorder %s1087_s5, %s936_s12  ;;  %p940_p2 = scmp.lt.u32.totalorder %s936_s12, %s1087_s5 }
 0x230   :  { %p942_p3 = pnand %p940_p2, %p937_p1 }
 0x232   :  { %945 = shalt.err (!%p942_p3)
}
 0x233   :  { %621 = dma.vmem_to_hbm [thread:$0]  %s616_s9, 256, %s1087_s5, [#allocation5], %s956_s1, %s956_s1, %s957_s17  }
 0x234   :  { %950 = dma.done.wait [#allocation5], 256  }
 0x235   :  { %951 = vsyncadd [#allocation5], 4294967040 }
 0x236   :  { %625 = vsyncpa [#allocation4], 1 }
 0x237   :  { %626 = vsyncpa [#allocation7], 1 }
 0x238   :  { %627 = vsyncpa [#allocation5], 1 }

</bundles_post_ra>
